<compile_context>
chip_gen: v7x
topology: tpu7x:2x2x1
jax: 0.10.0
libtpu: 0.0.40
codegen_flags: <defaults>
</compile_context>

<pallas_src>
import functools

import jax
import jax.numpy as jnp
from jax import lax
from jax.experimental import pallas as pl
from jax.experimental.pallas import tpu as pltpu


def _downsample_a_kernel(x_ref, o_ref, *, c_in):
    # x_ref: (TM, L) tile of even-H rows; columns packed as (w_out, w_parity, c).
    # Output row layout is (w_out, out_channel) with out_channel in [0, 2C):
    # the identical flat column index, so this is a masked identity copy where
    # w_parity==1 slots become the zero-padded channels.
    x = x_ref[...]
    col = lax.broadcasted_iota(jnp.int32, x.shape, 1)
    keep = (col % (2 * c_in)) < c_in
    o_ref[...] = jnp.where(keep, x, jnp.zeros_like(x))


def downsample_a(x):
    """x: (N, C, H, W) -> (N, 2*C, ceil(H/2), ceil(W/2)); stride fixed to 2 (as asserted in the module)."""
    N, C, H, W = x.shape
    # Single XLA layout pass: NCHW -> NHWC and keep only even H rows (AvgPool k=1 s=2 along H).
    xe = jnp.transpose(x, (0, 2, 3, 1))[:, ::2]              # (N, Ho, W, C)
    if W % 2:                                                # rare odd-W case: pad one column;
        xe = jnp.pad(xe, ((0, 0), (0, 0), (0, 1), (0, 0)))   # it lands on w_parity==1 -> masked to zero
    Ho = xe.shape[1]
    Wo = xe.shape[2] // 2
    L = 2 * Wo * C                                           # packed row length == output row length
    M = N * Ho
    xin = xe.reshape(M, L)

    TM = min(M, 256)                                         # full rows, or a 256-row (mult-of-8) tile
    grid = (pl.cdiv(M, TM),)

    out2d = pl.pallas_call(
        functools.partial(_downsample_a_kernel, c_in=C),
        out_shape=jax.ShapeDtypeStruct((M, L), x.dtype),
        grid=grid,
        in_specs=[pl.BlockSpec((TM, L), lambda i: (i, 0))],
        out_specs=pl.BlockSpec((TM, L), lambda i: (i, 0)),
        compiler_params=pltpu.CompilerParams(dimension_semantics=("parallel",)),
    )(xin)

    out = out2d.reshape(N, Ho, Wo, 2 * C)
    return jnp.transpose(out, (0, 3, 1, 2))                  # back to NCHW


if __name__ == "__main__":
    key = jax.random.PRNGKey(0)
    x = jax.random.normal(key, (2, 4, 16, 16), jnp.float32)  # small NCHW input
    out = downsample_a(x)
    jax.block_until_ready(out)

    # Reference: AvgPool2d(kernel_size=1, stride=2) == strided subsample; then zero channel concat.
    y = x[:, :, ::2, ::2]
    ref = jnp.concatenate([y, jnp.zeros_like(y)], axis=1)
    assert out.shape == (2, 8, 8, 8)
    assert bool(jnp.all(jnp.isfinite(out)))
    assert bool(jnp.allclose(out, ref, atol=0.0, rtol=0.0))
    print("KERNEL_OK")
</pallas_src>

<mosaic_0001>
module attributes {stable_mosaic.version = 11 : i64} {
  func.func @_downsample_a_kernel(%arg0: i32, %arg1: memref<16x64xf32, #tpu.memory_space<vmem>>, %arg2: memref<16x64xf32, #tpu.memory_space<vmem>>) attributes {dimension_semantics = [#tpu.dimension_semantics<parallel>], iteration_bounds = array<i64: 1>, scalar_prefetch = 0 : i64, scratch_operands = 0 : i64, tpu.core_type = #tpu.core_type<tc>, window_params = [{transform_indices = @transform_0, window_bounds = array<i64: 16, 64>}, {transform_indices = @transform_1, window_bounds = array<i64: 16, 64>}]} {
    %c0 = arith.constant 0 : index
    %c0_0 = arith.constant 0 : index
    %0 = vector.load %arg1[%c0, %c0_0] : memref<16x64xf32, #tpu.memory_space<vmem>>, vector<16x64xf32>
    %1 = tpu.iota {dimensions = array<i32: 1>} : vector<16x64xi32>
    %c8_i32 = arith.constant 8 : i32
    %c0_i32 = arith.constant 0 : i32
    %2 = arith.cmpi eq, %c8_i32, %c0_i32 : i32
    %c1_i32 = arith.constant 1 : i32
    %3 = arith.select %2, %c1_i32, %c8_i32 : i32
    %4 = vector.broadcast %3 : i32 to vector<16x64xi32>
    %5 = arith.remsi %1, %4 : vector<16x64xi32>
    %c0_i32_1 = arith.constant 0 : i32
    %6 = vector.broadcast %c0_i32_1 : i32 to vector<16x64xi32>
    %7 = arith.cmpi ne, %5, %6 : vector<16x64xi32>
    %c0_i32_2 = arith.constant 0 : i32
    %8 = vector.broadcast %c0_i32_2 : i32 to vector<16x64xi32>
    %9 = arith.cmpi slt, %5, %8 : vector<16x64xi32>
    %c0_i32_3 = arith.constant 0 : i32
    %10 = arith.cmpi slt, %3, %c0_i32_3 : i32
    %11 = vector.broadcast %10 : i1 to vector<16x64xi1>
    %12 = vector.broadcast %11 : vector<16x64xi1> to vector<16x64xi1>
    %13 = arith.xori %9, %12 : vector<16x64xi1>
    %14 = arith.andi %13, %7 : vector<16x64xi1>
    %15 = vector.broadcast %3 : i32 to vector<16x64xi32>
    %16 = arith.addi %5, %15 : vector<16x64xi32>
    %17 = arith.select %14, %16, %5 : vector<16x64xi1>, vector<16x64xi32>
    %c4_i32 = arith.constant 4 : i32
    %18 = vector.broadcast %c4_i32 : i32 to vector<16x64xi32>
    %19 = arith.cmpi slt, %17, %18 : vector<16x64xi32>
    %cst = arith.constant 0.000000e+00 : f32
    %20 = vector.broadcast %cst : f32 to vector<16x64xf32>
    %21 = arith.select %19, %0, %20 : vector<16x64xi1>, vector<16x64xf32>
    %c0_4 = arith.constant 0 : index
    %c0_5 = arith.constant 0 : index
    %22 = vector.load %arg2[%c0_4, %c0_5] : memref<16x64xf32, #tpu.memory_space<vmem>>, vector<16x64xf32>
    tpu.vector_store %arg2[%c0_4, %c0_5], %21 {strides = array<i32>} : memref<16x64xf32, #tpu.memory_space<vmem>>, vector<16x64xf32>,
    return
  }
  func.func @transform_0(%arg0: i32) -> (i32, i32) {
    %c0_i32 = arith.constant 0 : i32
    %c0_i32_0 = arith.constant 0 : i32
    return %arg0, %c0_i32 : i32, i32
  }
  func.func @transform_1(%arg0: i32) -> (i32, i32) {
    %c0_i32 = arith.constant 0 : i32
    %c0_i32_0 = arith.constant 0 : i32
    return %arg0, %c0_i32 : i32, i32
  }
}

</mosaic_0001>

<bundles_post_ra>
// kernel: tpu_custom_call.1
= control target key start
LH: loop header
LB: loop body
LE: loop exit
PB: predicated region body
PF: predicated region fallthrough
CT: control target
= control target key end

     0   :  { %6 = vsyncpa [#allocation3], 0  ;;  %s158_s0 = inlined_call_operand.hbm [shape: f32[16,64], index: 0, kind: input, shape index: {}]   ;;  %s159_s1 = inlined_call_operand.hbm [shape: f32[16,64], index: 1, kind: output, shape index: {}]  }
   0x1   :  { %7 = vsyncpa [#allocation4], 0  ;;  %s114_s6 = smov [#allocation2]   ;;  %s66_s10 = scalar_lea.hbm %s158_s0, 256 }
   0x2   :  { %s13_s7 = sshll.u32 %s114_s6, 4  ;;  %p67_p0 = scmp.ne.s32.totalorder %s158_s0, %s66_s10  ;;  %s14_s7 = int_to_ptr.vmem [resolvable:$true] %s13_s7 }
   0x3   :  { %p70_p1 = scmp.lt.u32.totalorder %s66_s10, %s158_s0 }
   0x5   :  { %p72_p2 = pnand %p70_p1, %p67_p0 }
   0x7   :  { %75 = shalt.err (!%p72_p2)
}
   0x8   :  { %s76_s15 = scalar_lea.vmem %s14_s7, 256  ;;  %p81_p4 = scmp.lt.s32.totalorder %s14_s7, %s14_s7 }
   0x9   :  { %p77_p3 = scmp.ne.s32.totalorder %s14_s7, %s76_s15  ;;  %p82_p5 = scmp.lt.s32.totalorder %s76_s15, %s76_s15 }
   0xb   :  { %p83_p6 = por %p82_p5, %p81_p4 }
   0xd   :  { %p84_p7 = pnand %p83_p6, %p77_p3 }
   0xf   :  { %87 = shalt.err (!%p84_p7)
}
  0x10   :  { %s115_s16 = smov 128   ;;  %s116_s17 = smov 8  }
  0x11   :  { %19 = dma.hbm_to_vmem [thread:$0]  %s158_s0, 256, %s14_s7, [#allocation3], %s115_s16, %s115_s16, %s116_s17  }
  0x12   :  { %110 = dma.done.wait [#allocation3], 256  }
  0x13   :  { %111 = vsyncadd [#allocation3], 4294967040  ;;  %v25_v0 = vlaneseq  ;;  %s117_s20 = smov [#allocation5]   ;;  %vm42_vm1 = vcmask 523264   ;;  %v23_v3 = vld [vmem:[#allocation2] sm:$0xff]  ;;  %v24_v4 = vld [vmem:[#allocation2 + $0x8] sm:$0xff] }
  0x14   :  { %s50_s21 = sshll.u32 %s117_s20, 4  ;;  %s51_s21 = int_to_ptr.vmem [resolvable:$true] %s50_s21 }
  0x15   :  { %v26_v1 = vand.u32 127, %v25_v0  ;;  %s88_s22 = scalar_lea.vmem %s51_s21, 256  ;;  %p93_p9 = scmp.lt.s32.totalorder %s51_s21, %s51_s21 }
  0x16   :  { %p89_p8 = scmp.ne.s32.totalorder %s51_s21, %s88_s22  ;;  %p94_p10 = scmp.lt.s32.totalorder %s88_s22, %s88_s22 }
  0x17   :  { %v31_v2 = vand.u32 7, %v26_v1 }
  0x18   :  { %p95_p11 = por %p94_p10, %p93_p9 }
  0x19   :  { %vm39_vm0 = vcmp.lt.s32.totalorder %v31_v2, 4 }
  0x1a   :  { %v40_v5 = vsel %vm39_vm0, %v23_v3, 0.0  ;;  %v41_v6 = vsel %vm39_vm0, %v24_v4, 0.0  ;;  %p96_p12 = pnand %p95_p11, %p89_p8 }
  0x1b   :  { %43 = vst.msk [vmem:[#allocation5] sm:$0xff] %vm42_vm1, %v40_v5  ;;  %44 = vst.msk [vmem:[#allocation5 + $0x8] sm:$0xff] %vm42_vm1, %v41_v6 }
  0x1c   :  { %99 = shalt.err (!%p96_p12)
}
  0x1d   :  { %s100_s24 = scalar_lea.hbm %s159_s1, 256 }
  0x1e   :  { %p101_p13 = scmp.ne.s32.totalorder %s159_s1, %s100_s24  ;;  %p104_p0 = scmp.lt.u32.totalorder %s100_s24, %s159_s1 }
  0x20   :  { %p106_p1 = pnand %p104_p0, %p101_p13 }
  0x22   :  { %109 = shalt.err (!%p106_p1)
}
  0x23   :  { %56 = dma.vmem_to_hbm [thread:$0]  %s51_s21, 256, %s159_s1, [#allocation4], %s115_s16, %s115_s16, %s116_s17  }
  0x24   :  { %112 = dma.done.wait [#allocation4], 256  }
  0x25   :  { %113 = vsyncadd [#allocation4], 4294967040 }
  0x26   :  { %60 = vsyncpa [#allocation3], 1 }
  0x27   :  { %61 = vsyncpa [#allocation4], 1 }

</bundles_post_ra>
